<compile_context>
chip_gen: v6e
topology: v6e:2x2x1
jax: 0.10.0
libtpu: 0.0.40
codegen_flags: <defaults>
</compile_context>

<pallas_src>
import functools

import jax
import jax.numpy as jnp
from jax.experimental import pallas as pl
from jax.experimental.pallas import tpu as pltpu

INPUT_DIM = 150
HIDDEN_DIM = 150
N_LINEAR = 6            # 5x (Linear -> ReLU [-> Dropout]) then output Linear
F_PAD = 256             # lane-aligned feature width (multiple of 128)
DEFAULT_TILE_B = 1024   # target batch rows per grid step
BATCH_GRANULE = 8       # sublane granule for batch padding / tile sizing


def _round_up(n, m):
    return (n + m - 1) // m * m


def _choose_tiling(batch, target_tile_b):
    """Pick (tile_b, batch_pad) with minimal slack and >=2 tiles when possible."""
    batch_g = _round_up(max(batch, 1), BATCH_GRANULE)
    n_tiles = pl.cdiv(batch_g, target_tile_b)
    # v7x: keep at least 2 tiles so the "parallel" batch axis can shard across
    # both TensorCores (free on v5e/v6e, which have a single TC).
    if batch_g >= 2 * BATCH_GRANULE:
        n_tiles = max(n_tiles, 2)
    tile_b = _round_up(pl.cdiv(batch_g, n_tiles), BATCH_GRANULE)
    batch_pad = tile_b * n_tiles
    return tile_b, batch_pad


def _mlp_kernel(x_ref, *refs):
    """Fused 6-layer MLP on one (tile_b, F_PAD) activation tile.

    refs = (w1, b1, ..., w6, b6, o_ref).  x is bf16; weights bf16 (F_PAD,F_PAD);
    biases f32 (1, F_PAD).  MXU accumulates in f32; bias-add / ReLU stay f32 on
    the VPU; a single bf16 cast feeds the next layer's dot.
    """
    o_ref = refs[-1]
    param_refs = refs[:-1]
    n_layers = len(param_refs) // 2

    h = x_ref[...]                            # bf16 (tile_b, F_PAD)
    for layer in range(n_layers):
        w = param_refs[2 * layer][...]        # bf16 (F_PAD, F_PAD)
        b = param_refs[2 * layer + 1][...]    # f32  (1, F_PAD)
        acc = jnp.dot(h, w, preferred_element_type=jnp.float32) + b
        if layer < n_layers - 1:              # ReLU on hidden layers only
            acc = jnp.maximum(acc, 0.0)
            h = acc.astype(jnp.bfloat16)      # single cast feeding next MXU op
        else:
            h = acc
        # TODO(synk): training-mode dropout (random masking) not implemented;
        # eval/inference dropout is identity and is elided.

    o_ref[...] = h.astype(o_ref.dtype)


def ann_forward(x, padded_params, *, tile_b=DEFAULT_TILE_B):
    """x: (batch, INPUT_DIM) f32.  padded_params: [w1,b1,...,w6,b6], padded.

    Returns (batch, INPUT_DIM) f32.
    """
    batch, feat = x.shape
    tile_b, batch_pad = _choose_tiling(batch, tile_b)

    # bf16, lane-dense, zero-padded activation slab.  allow_input_fusion below
    # lets XLA fuse this pad into the pallas_call operand.
    x_pad = jnp.zeros((batch_pad, F_PAD), jnp.bfloat16)
    x_pad = x_pad.at[:batch, :feat].set(x.astype(jnp.bfloat16))

    act_in_spec = pl.BlockSpec((tile_b, F_PAD), lambda i: (i, 0))
    act_out_spec = pl.BlockSpec((tile_b, F_PAD), lambda i: (i, 0))
    w_spec = pl.BlockSpec((F_PAD, F_PAD), lambda i: (0, 0))  # VMEM-resident
    b_spec = pl.BlockSpec((1, F_PAD), lambda i: (0, 0))      # VMEM-resident

    in_specs = [act_in_spec]
    for _ in range(N_LINEAR):
        in_specs += [w_spec, b_spec]

    out = pl.pallas_call(
        _mlp_kernel,
        out_shape=jax.ShapeDtypeStruct((batch_pad, F_PAD), jnp.float32),
        grid=(batch_pad // tile_b,),
        in_specs=in_specs,
        out_specs=act_out_spec,
        compiler_params=pltpu.CompilerParams(
            # Batch tiles are independent -> shard across TCs on v7x.
            dimension_semantics=("parallel",),
            # Actual VMEM use is < 8 MiB at tile_b=1024; leave headroom on v7x.
            vmem_limit_bytes=32 * 1024 * 1024,
            # Allow XLA to fuse the zero-pad of the activation operand into
            # the custom call; params are padded once outside the jit.
            allow_input_fusion=[True] + [False] * len(padded_params),
        ),
    )(x_pad, *padded_params)

    return out[:batch, :INPUT_DIM]


def init_params(key):
    """Deterministic PyTorch-style uniform init for 6 Linear layers.

    Weights stored as (in_features, out_features) so the kernel does x @ W + b;
    biases stored as (1, out_features).
    """
    dims = (
        [(INPUT_DIM, HIDDEN_DIM)]
        + [(HIDDEN_DIM, HIDDEN_DIM)] * 4
        + [(HIDDEN_DIM, INPUT_DIM)]
    )
    params = []
    for fan_in, fan_out in dims:
        key, kw, kb = jax.random.split(key, 3)
        bound = 1.0 / jnp.sqrt(jnp.float32(fan_in))
        w = jax.random.uniform(
            kw, (fan_in, fan_out), jnp.float32, minval=-bound, maxval=bound)
        b = jax.random.uniform(
            kb, (1, fan_out), jnp.float32, minval=-bound, maxval=bound)
        params += [w, b]
    return params


def pad_params(params):
    """Zero-pad weights to (F_PAD, F_PAD) bf16 and biases to (1, F_PAD) f32."""
    padded = []
    for i in range(0, len(params), 2):
        w, b = params[i], params[i + 1]
        wp = jnp.zeros((F_PAD, F_PAD), jnp.float32)
        wp = wp.at[: w.shape[0], : w.shape[1]].set(w)
        bp = jnp.zeros((1, F_PAD), jnp.float32)
        bp = bp.at[:, : b.shape[1]].set(b)
        padded += [wp.astype(jnp.bfloat16), bp]
    return padded


def reference_forward(x, params):
    """Pure-JAX f32 reference (eval mode: dropout = identity)."""
    h = x
    n_layers = len(params) // 2
    for layer in range(n_layers):
        w, b = params[2 * layer], params[2 * layer + 1]
        h = h @ w + b
        if layer < n_layers - 1:
            h = jnp.maximum(h, 0.0)
    return h


if __name__ == "__main__":
    key = jax.random.PRNGKey(0)
    key, kx = jax.random.split(key)

    batch = 8
    x = jax.random.normal(kx, (batch, INPUT_DIM), jnp.float32)
    params = init_params(key)
    kernel_params = pad_params(params)   # pad/cast once, outside the jit

    fwd = jax.jit(functools.partial(ann_forward))
    out = jax.block_until_ready(fwd(x, kernel_params))

    ref = reference_forward(x, params)
    assert out.shape == (batch, INPUT_DIM)
    # bf16 matmul operands with f32 accumulation -> small drift vs f32 reference.
    assert jnp.allclose(out, ref, atol=3e-2, rtol=3e-2), "mismatch vs. reference"

    print("KERNEL_OK")
</pallas_src>

<mosaic_0001>
module attributes {stable_mosaic.version = 11 : i64} {
  func.func @_mlp_kernel(%arg0: i32, %arg1: memref<8x256xbf16, #tpu.memory_space<vmem>>, %arg2: memref<256x256xbf16, #tpu.memory_space<vmem>>, %arg3: memref<1x256xf32, #tpu.memory_space<vmem>>, %arg4: memref<256x256xbf16, #tpu.memory_space<vmem>>, %arg5: memref<1x256xf32, #tpu.memory_space<vmem>>, %arg6: memref<256x256xbf16, #tpu.memory_space<vmem>>, %arg7: memref<1x256xf32, #tpu.memory_space<vmem>>, %arg8: memref<256x256xbf16, #tpu.memory_space<vmem>>, %arg9: memref<1x256xf32, #tpu.memory_space<vmem>>, %arg10: memref<256x256xbf16, #tpu.memory_space<vmem>>, %arg11: memref<1x256xf32, #tpu.memory_space<vmem>>, %arg12: memref<256x256xbf16, #tpu.memory_space<vmem>>, %arg13: memref<1x256xf32, #tpu.memory_space<vmem>>, %arg14: memref<8x256xf32, #tpu.memory_space<vmem>>) attributes {dimension_semantics = [#tpu.dimension_semantics<parallel>], iteration_bounds = array<i64: 1>, scalar_prefetch = 0 : i64, scratch_operands = 0 : i64, tpu.core_type = #tpu.core_type<tc>, window_params = [{transform_indices = @transform_0, window_bounds = array<i64: 8, 256>}, {pipeline_mode = #tpu.pipeline_mode<synchronous>, transform_indices = @transform_1, window_bounds = array<i64: 256, 256>}, {pipeline_mode = #tpu.pipeline_mode<synchronous>, transform_indices = @transform_2, window_bounds = array<i64: 1, 256>}, {pipeline_mode = #tpu.pipeline_mode<synchronous>, transform_indices = @transform_3, window_bounds = array<i64: 256, 256>}, {pipeline_mode = #tpu.pipeline_mode<synchronous>, transform_indices = @transform_4, window_bounds = array<i64: 1, 256>}, {pipeline_mode = #tpu.pipeline_mode<synchronous>, transform_indices = @transform_5, window_bounds = array<i64: 256, 256>}, {pipeline_mode = #tpu.pipeline_mode<synchronous>, transform_indices = @transform_6, window_bounds = array<i64: 1, 256>}, {pipeline_mode = #tpu.pipeline_mode<synchronous>, transform_indices = @transform_7, window_bounds = array<i64: 256, 256>}, {pipeline_mode = #tpu.pipeline_mode<synchronous>, transform_indices = @transform_8, window_bounds = array<i64: 1, 256>}, {pipeline_mode = #tpu.pipeline_mode<synchronous>, transform_indices = @transform_9, window_bounds = array<i64: 256, 256>}, {pipeline_mode = #tpu.pipeline_mode<synchronous>, transform_indices = @transform_10, window_bounds = array<i64: 1, 256>}, {pipeline_mode = #tpu.pipeline_mode<synchronous>, transform_indices = @transform_11, window_bounds = array<i64: 256, 256>}, {pipeline_mode = #tpu.pipeline_mode<synchronous>, transform_indices = @transform_12, window_bounds = array<i64: 1, 256>}, {transform_indices = @transform_13, window_bounds = array<i64: 8, 256>}]} {
    %c0 = arith.constant 0 : index
    %c0_0 = arith.constant 0 : index
    %0 = vector.load %arg1[%c0, %c0_0] : memref<8x256xbf16, #tpu.memory_space<vmem>>, vector<8x256xbf16>
    %c0_1 = arith.constant 0 : index
    %c0_2 = arith.constant 0 : index
    %1 = vector.load %arg2[%c0_1, %c0_2] : memref<256x256xbf16, #tpu.memory_space<vmem>>, vector<256x256xbf16>
    %c0_3 = arith.constant 0 : index
    %c0_4 = arith.constant 0 : index
    %2 = vector.load %arg3[%c0_3, %c0_4] : memref<1x256xf32, #tpu.memory_space<vmem>>, vector<1x256xf32>
    %cst = arith.constant dense<0.000000e+00> : vector<8x256xf32>
    %3 = tpu.matmul %0, %1, %cst {dimension_numbers = #tpu.dot_dimension_numbers<[1], [0], [0], [1], [0, 0, 1, 1], [], []>} : vector<8x256xbf16>, vector<256x256xbf16>, vector<8x256xf32> -> vector<8x256xf32>
    %4 = vector.broadcast %2 : vector<1x256xf32> to vector<8x256xf32>
    %5 = arith.addf %3, %4 : vector<8x256xf32>
    %cst_5 = arith.constant 0.000000e+00 : f32
    %6 = vector.broadcast %cst_5 : f32 to vector<8x256xf32>
    %7 = arith.maximumf %5, %6 : vector<8x256xf32>
    %8 = arith.truncf %7 : vector<8x256xf32> to vector<8x256xbf16>
    %c0_6 = arith.constant 0 : index
    %c0_7 = arith.constant 0 : index
    %9 = vector.load %arg4[%c0_6, %c0_7] : memref<256x256xbf16, #tpu.memory_space<vmem>>, vector<256x256xbf16>
    %c0_8 = arith.constant 0 : index
    %c0_9 = arith.constant 0 : index
    %10 = vector.load %arg5[%c0_8, %c0_9] : memref<1x256xf32, #tpu.memory_space<vmem>>, vector<1x256xf32>
    %cst_10 = arith.constant dense<0.000000e+00> : vector<8x256xf32>
    %11 = tpu.matmul %8, %9, %cst_10 {dimension_numbers = #tpu.dot_dimension_numbers<[1], [0], [0], [1], [0, 0, 1, 1], [], []>} : vector<8x256xbf16>, vector<256x256xbf16>, vector<8x256xf32> -> vector<8x256xf32>
    %12 = vector.broadcast %10 : vector<1x256xf32> to vector<8x256xf32>
    %13 = arith.addf %11, %12 : vector<8x256xf32>
    %cst_11 = arith.constant 0.000000e+00 : f32
    %14 = vector.broadcast %cst_11 : f32 to vector<8x256xf32>
    %15 = arith.maximumf %13, %14 : vector<8x256xf32>
    %16 = arith.truncf %15 : vector<8x256xf32> to vector<8x256xbf16>
    %c0_12 = arith.constant 0 : index
    %c0_13 = arith.constant 0 : index
    %17 = vector.load %arg6[%c0_12, %c0_13] : memref<256x256xbf16, #tpu.memory_space<vmem>>, vector<256x256xbf16>
    %c0_14 = arith.constant 0 : index
    %c0_15 = arith.constant 0 : index
    %18 = vector.load %arg7[%c0_14, %c0_15] : memref<1x256xf32, #tpu.memory_space<vmem>>, vector<1x256xf32>
    %cst_16 = arith.constant dense<0.000000e+00> : vector<8x256xf32>
    %19 = tpu.matmul %16, %17, %cst_16 {dimension_numbers = #tpu.dot_dimension_numbers<[1], [0], [0], [1], [0, 0, 1, 1], [], []>} : vector<8x256xbf16>, vector<256x256xbf16>, vector<8x256xf32> -> vector<8x256xf32>
    %20 = vector.broadcast %18 : vector<1x256xf32> to vector<8x256xf32>
    %21 = arith.addf %19, %20 : vector<8x256xf32>
    %cst_17 = arith.constant 0.000000e+00 : f32
    %22 = vector.broadcast %cst_17 : f32 to vector<8x256xf32>
    %23 = arith.maximumf %21, %22 : vector<8x256xf32>
    %24 = arith.truncf %23 : vector<8x256xf32> to vector<8x256xbf16>
    %c0_18 = arith.constant 0 : index
    %c0_19 = arith.constant 0 : index
    %25 = vector.load %arg8[%c0_18, %c0_19] : memref<256x256xbf16, #tpu.memory_space<vmem>>, vector<256x256xbf16>
    %c0_20 = arith.constant 0 : index
    %c0_21 = arith.constant 0 : index
    %26 = vector.load %arg9[%c0_20, %c0_21] : memref<1x256xf32, #tpu.memory_space<vmem>>, vector<1x256xf32>
    %cst_22 = arith.constant dense<0.000000e+00> : vector<8x256xf32>
    %27 = tpu.matmul %24, %25, %cst_22 {dimension_numbers = #tpu.dot_dimension_numbers<[1], [0], [0], [1], [0, 0, 1, 1], [], []>} : vector<8x256xbf16>, vector<256x256xbf16>, vector<8x256xf32> -> vector<8x256xf32>
    %28 = vector.broadcast %26 : vector<1x256xf32> to vector<8x256xf32>
    %29 = arith.addf %27, %28 : vector<8x256xf32>
    %cst_23 = arith.constant 0.000000e+00 : f32
    %30 = vector.broadcast %cst_23 : f32 to vector<8x256xf32>
    %31 = arith.maximumf %29, %30 : vector<8x256xf32>
    %32 = arith.truncf %31 : vector<8x256xf32> to vector<8x256xbf16>
    %c0_24 = arith.constant 0 : index
    %c0_25 = arith.constant 0 : index
    %33 = vector.load %arg10[%c0_24, %c0_25] : memref<256x256xbf16, #tpu.memory_space<vmem>>, vector<256x256xbf16>
    %c0_26 = arith.constant 0 : index
    %c0_27 = arith.constant 0 : index
    %34 = vector.load %arg11[%c0_26, %c0_27] : memref<1x256xf32, #tpu.memory_space<vmem>>, vector<1x256xf32>
    %cst_28 = arith.constant dense<0.000000e+00> : vector<8x256xf32>
    %35 = tpu.matmul %32, %33, %cst_28 {dimension_numbers = #tpu.dot_dimension_numbers<[1], [0], [0], [1], [0, 0, 1, 1], [], []>} : vector<8x256xbf16>, vector<256x256xbf16>, vector<8x256xf32> -> vector<8x256xf32>
    %36 = vector.broadcast %34 : vector<1x256xf32> to vector<8x256xf32>
    %37 = arith.addf %35, %36 : vector<8x256xf32>
    %cst_29 = arith.constant 0.000000e+00 : f32
    %38 = vector.broadcast %cst_29 : f32 to vector<8x256xf32>
    %39 = arith.maximumf %37, %38 : vector<8x256xf32>
    %40 = arith.truncf %39 : vector<8x256xf32> to vector<8x256xbf16>
    %c0_30 = arith.constant 0 : index
    %c0_31 = arith.constant 0 : index
    %41 = vector.load %arg12[%c0_30, %c0_31] : memref<256x256xbf16, #tpu.memory_space<vmem>>, vector<256x256xbf16>
    %c0_32 = arith.constant 0 : index
    %c0_33 = arith.constant 0 : index
    %42 = vector.load %arg13[%c0_32, %c0_33] : memref<1x256xf32, #tpu.memory_space<vmem>>, vector<1x256xf32>
    %cst_34 = arith.constant dense<0.000000e+00> : vector<8x256xf32>
    %43 = tpu.matmul %40, %41, %cst_34 {dimension_numbers = #tpu.dot_dimension_numbers<[1], [0], [0], [1], [0, 0, 1, 1], [], []>} : vector<8x256xbf16>, vector<256x256xbf16>, vector<8x256xf32> -> vector<8x256xf32>
    %44 = vector.broadcast %42 : vector<1x256xf32> to vector<8x256xf32>
    %45 = arith.addf %43, %44 : vector<8x256xf32>
    %c0_35 = arith.constant 0 : index
    %c0_36 = arith.constant 0 : index
    %46 = vector.load %arg14[%c0_35, %c0_36] : memref<8x256xf32, #tpu.memory_space<vmem>>, vector<8x256xf32>
    tpu.vector_store %arg14[%c0_35, %c0_36], %45 {strides = array<i32>} : memref<8x256xf32, #tpu.memory_space<vmem>>, vector<8x256xf32>,
    return
  }
  func.func @transform_0(%arg0: i32) -> (i32, i32) {
    %c0_i32 = arith.constant 0 : i32
    %c0_i32_0 = arith.constant 0 : i32
    return %arg0, %c0_i32 : i32, i32
  }
  func.func @transform_1(%arg0: i32) -> (i32, i32) {
    %c0_i32 = arith.constant 0 : i32
    %c0_i32_0 = arith.constant 0 : i32
    %c0_i32_1 = arith.constant 0 : i32
    return %c0_i32, %c0_i32_0 : i32, i32
  }
  func.func @transform_2(%arg0: i32) -> (i32, i32) {
    %c0_i32 = arith.constant 0 : i32
    %c0_i32_0 = arith.constant 0 : i32
    %c0_i32_1 = arith.constant 0 : i32
    return %c0_i32, %c0_i32_0 : i32, i32
  }
  func.func @transform_3(%arg0: i32) -> (i32, i32) {
    %c0_i32 = arith.constant 0 : i32
    %c0_i32_0 = arith.constant 0 : i32
    %c0_i32_1 = arith.constant 0 : i32
    return %c0_i32, %c0_i32_0 : i32, i32
  }
  func.func @transform_4(%arg0: i32) -> (i32, i32) {
    %c0_i32 = arith.constant 0 : i32
    %c0_i32_0 = arith.constant 0 : i32
    %c0_i32_1 = arith.constant 0 : i32
    return %c0_i32, %c0_i32_0 : i32, i32
  }
  func.func @transform_5(%arg0: i32) -> (i32, i32) {
    %c0_i32 = arith.constant 0 : i32
    %c0_i32_0 = arith.constant 0 : i32
    %c0_i32_1 = arith.constant 0 : i32
    return %c0_i32, %c0_i32_0 : i32, i32
  }
  func.func @transform_6(%arg0: i32) -> (i32, i32) {
    %c0_i32 = arith.constant 0 : i32
    %c0_i32_0 = arith.constant 0 : i32
    %c0_i32_1 = arith.constant 0 : i32
    return %c0_i32, %c0_i32_0 : i32, i32
  }
  func.func @transform_7(%arg0: i32) -> (i32, i32) {
    %c0_i32 = arith.constant 0 : i32
    %c0_i32_0 = arith.constant 0 : i32
    %c0_i32_1 = arith.constant 0 : i32
    return %c0_i32, %c0_i32_0 : i32, i32
  }
  func.func @transform_8(%arg0: i32) -> (i32, i32) {
    %c0_i32 = arith.constant 0 : i32
    %c0_i32_0 = arith.constant 0 : i32
    %c0_i32_1 = arith.constant 0 : i32
    return %c0_i32, %c0_i32_0 : i32, i32
  }
  func.func @transform_9(%arg0: i32) -> (i32, i32) {
    %c0_i32 = arith.constant 0 : i32
    %c0_i32_0 = arith.constant 0 : i32
    %c0_i32_1 = arith.constant 0 : i32
    return %c0_i32, %c0_i32_0 : i32, i32
  }
  func.func @transform_10(%arg0: i32) -> (i32, i32) {
    %c0_i32 = arith.constant 0 : i32
    %c0_i32_0 = arith.constant 0 : i32
    %c0_i32_1 = arith.constant 0 : i32
    return %c0_i32, %c0_i32_0 : i32, i32
  }
  func.func @transform_11(%arg0: i32) -> (i32, i32) {
    %c0_i32 = arith.constant 0 : i32
    %c0_i32_0 = arith.constant 0 : i32
    %c0_i32_1 = arith.constant 0 : i32
    return %c0_i32, %c0_i32_0 : i32, i32
  }
  func.func @transform_12(%arg0: i32) -> (i32, i32) {
    %c0_i32 = arith.constant 0 : i32
    %c0_i32_0 = arith.constant 0 : i32
    %c0_i32_1 = arith.constant 0 : i32
    return %c0_i32, %c0_i32_0 : i32, i32
  }
  func.func @transform_13(%arg0: i32) -> (i32, i32) {
    %c0_i32 = arith.constant 0 : i32
    %c0_i32_0 = arith.constant 0 : i32
    return %arg0, %c0_i32 : i32, i32
  }
}

</mosaic_0001>

<bundles_post_ra>
// kernel: ann_forward.2
= control target key start
LH: loop header
LB: loop body
LE: loop exit
PB: predicated region body
PF: predicated region fallthrough
CT: control target
= control target key end

     0   :  { %s2509_s0 = inlined_call_operand.hbm [shape: bf16[256,256], index: 0, kind: input, shape index: {}]   ;;  %s2510_s1 = inlined_call_operand.vmem [shape: f32[1,256], index: 1, kind: input, shape index: {}]   ;;  %s2511_s2 = inlined_call_operand.hbm [shape: bf16[256,256], index: 2, kind: input, shape index: {}]   ;;  %s2512_s3 = inlined_call_operand.vmem [shape: f32[1,256], index: 3, kind: input, shape index: {}]   ;;  %s2513_s4 = inlined_call_operand.hbm [shape: bf16[256,256], index: 4, kind: input, shape index: {}]   ;;  %s2514_s5 = inlined_call_operand.vmem [shape: f32[1,256], index: 5, kind: input, shape index: {}]   ;;  %s2515_s6 = inlined_call_operand.hbm [shape: bf16[256,256], index: 6, kind: input, shape index: {}]   ;;  %s2516_s7 = inlined_call_operand.vmem [shape: f32[1,256], index: 7, kind: input, shape index: {}]   ;;  %s2517_s8 = inlined_call_operand.hbm [shape: bf16[256,256], index: 8, kind: input, shape index: {}]   ;;  %s2518_s9 = inlined_call_operand.vmem [shape: f32[1,256], index: 9, kind: input, shape index: {}]   ;;  %s2519_s10 = inlined_call_operand.hbm [shape: bf16[256,256], index: 10, kind: input, shape index: {}]   ;;  %s2520_s11 = inlined_call_operand.vmem [shape: f32[1,256], index: 11, kind: input, shape index: {}]   ;;  %s2521_s12 = inlined_call_operand.vmem [shape: bf16[8,150], index: 12, kind: input, shape index: {}]   ;;  %s2522_s13 = inlined_call_operand.<no memory space> [shape: bf16[], index: 13, kind: input, shape index: {}]   ;;  %s2523_s14 = inlined_call_operand.hbm [shape: f32[8,256], index: 14, kind: output, shape index: {}]  }
   0x1   :  { %v19_v0 = vstv %s2522_s13 }
   0x2   :  { %v2419_v1 = vunpack.i.l.bf16 %v19_v0 }
   0x3   :  { %24 = vsyncpa [#allocation8], 0 }
   0x4   :  { %25 = vsyncpa [#allocation11], 0 }
   0x5   :  { %26 = vsyncpa [#allocation14], 0 }
   0x6   :  { %27 = vsyncpa [#allocation17], 0 }
   0x7   :  { %28 = vsyncpa [#allocation9], 0  ;;  %s2331_s15 = smov [#allocation10]   ;;  %s2332_s17 = smov [#allocation13]  }
   0x8   :  { %s50_s16 = sshll.u32 %s2331_s15, 4  ;;  %s78_s18 = sshll.u32 %s2332_s17, 4  ;;  %s51_s16 = int_to_ptr.vmem [resolvable:$true] %s50_s16  ;;  %s79_s18 = int_to_ptr.vmem [resolvable:$true] %s78_s18 }
   0x9   :  { %s2189_s19 = scalar_lea.vmem %s51_s16, 4096  ;;  %p2194_p1 = scmp.lt.s32.totalorder %s51_s16, %s51_s16 }
   0xa   :  { %p2190_p0 = scmp.ne.s32.totalorder %s51_s16, %s2189_s19  ;;  %p2195_p2 = scmp.lt.s32.totalorder %s2189_s19, %s2189_s19 }
   0xc   :  { %p2196_p3 = por %p2195_p2, %p2194_p1 }
   0xe   :  { %p2197_p4 = pnand %p2196_p3, %p2190_p0 }
  0x10   :  { %2200 = shalt.err (!%p2197_p4)
}
  0x11   :  { %s2333_s13 = smov 128   ;;  %s2334_s20 = smov 8  }
  0x12   :  { %56 = dma.hbm_to_vmem [thread:$0]  %s2511_s2, 4096, %s51_s16, [#allocation11], %s2333_s13, %s2333_s13, %s2334_s20  }
  0x13   :  { %s2209_s23 = scalar_lea.vmem %s79_s18, 4096  ;;  %p2214_p6 = scmp.lt.s32.totalorder %s79_s18, %s79_s18 }
  0x14   :  { %p2210_p5 = scmp.ne.s32.totalorder %s79_s18, %s2209_s23  ;;  %p2215_p7 = scmp.lt.s32.totalorder %s2209_s23, %s2209_s23 }
  0x16   :  { %p2216_p8 = por %p2215_p7, %p2214_p6 }
  0x18   :  { %p2217_p9 = pnand %p2216_p8, %p2210_p5 }
  0x1a   :  { %2220 = shalt.err (!%p2217_p9)
}
  0x1b   :  { %84 = dma.hbm_to_vmem [thread:$0]  %s2515_s6, 4096, %s79_s18, [#allocation14], %s2333_s13, %s2333_s13, %s2334_s20  }
  0x1c   :  { %s2335_s26 = smov [#allocation7]   ;;  %s2336_s28 = smov [#allocation12]  }
  0x1d   :  { %s36_s27 = sshll.u32 %s2335_s26, 4  ;;  %s64_s29 = sshll.u32 %s2336_s28, 4  ;;  %s37_s27 = int_to_ptr.vmem [resolvable:$true] %s36_s27  ;;  %s65_s29 = int_to_ptr.vmem [resolvable:$true] %s64_s29 }
  0x1e   :  { %s2229_s2 = scalar_lea.vmem %s37_s27, 4096  ;;  %p2234_p11 = scmp.lt.s32.totalorder %s37_s27, %s37_s27 }
  0x1f   :  { %p2230_p10 = scmp.ne.s32.totalorder %s37_s27, %s2229_s2  ;;  %p2235_p12 = scmp.lt.s32.totalorder %s2229_s2, %s2229_s2 }
  0x21   :  { %p2236_p13 = por %p2235_p12, %p2234_p11 }
  0x23   :  { %p2237_p0 = pnand %p2236_p13, %p2230_p10 }
  0x25   :  { %2240 = shalt.err (!%p2237_p0)
}
  0x26   :  { %42 = dma.hbm_to_vmem [thread:$0]  %s2509_s0, 4096, %s37_s27, [#allocation8], %s2333_s13, %s2333_s13, %s2334_s20  }
  0x27   :  { %s2249_s6 = scalar_lea.vmem %s65_s29, 4096  ;;  %p2254_p2 = scmp.lt.s32.totalorder %s65_s29, %s65_s29 }
  0x28   :  { %p2250_p1 = scmp.ne.s32.totalorder %s65_s29, %s2249_s6  ;;  %p2255_p3 = scmp.lt.s32.totalorder %s2249_s6, %s2249_s6 }
  0x2a   :  { %p2256_p4 = por %p2255_p3, %p2254_p2 }
  0x2c   :  { %p2257_p5 = pnand %p2256_p4, %p2250_p1 }
  0x2e   :  { %2260 = shalt.err (!%p2257_p5)
}
  0x2f   :  { %70 = dma.hbm_to_vmem [thread:$0]  %s2513_s4, 4096, %s65_s29, [#allocation11], %s2333_s13, %s2333_s13, %s2334_s20  }
  0x30   :  { %s2337_s18 = smov [#allocation15]   ;;  %s2338_s21 = smov [#allocation16]  }
  0x31   :  { %s92_s19 = sshll.u32 %s2337_s18, 4  ;;  %s106_s22 = sshll.u32 %s2338_s21, 4  ;;  %s93_s19 = int_to_ptr.vmem [resolvable:$true] %s92_s19  ;;  %s107_s22 = int_to_ptr.vmem [resolvable:$true] %s106_s22 }
  0x32   :  { %s2269_s0 = scalar_lea.vmem %s93_s19, 4096  ;;  %p2274_p7 = scmp.lt.s32.totalorder %s93_s19, %s93_s19 }
  0x33   :  { %p2270_p6 = scmp.ne.s32.totalorder %s93_s19, %s2269_s0  ;;  %p2275_p8 = scmp.lt.s32.totalorder %s2269_s0, %s2269_s0 }
  0x35   :  { %p2276_p9 = por %p2275_p8, %p2274_p7 }
  0x37   :  { %p2277_p10 = pnand %p2276_p9, %p2270_p6 }
  0x39   :  { %2280 = shalt.err (!%p2277_p10)
}
  0x3a   :  { %98 = dma.hbm_to_vmem [thread:$0]  %s2517_s8, 4096, %s93_s19, [#allocation14], %s2333_s13, %s2333_s13, %s2334_s20  }
  0x3b   :  { %s2289_s4 = scalar_lea.vmem %s107_s22, 4096  ;;  %p2294_p12 = scmp.lt.s32.totalorder %s107_s22, %s107_s22 }
  0x3c   :  { %p2290_p11 = scmp.ne.s32.totalorder %s107_s22, %s2289_s4  ;;  %p2295_p13 = scmp.lt.s32.totalorder %s2289_s4, %s2289_s4 }
  0x3e   :  { %p2296_p0 = por %p2295_p13, %p2294_p12 }
  0x40   :  { %p2297_p1 = pnand %p2296_p0, %p2290_p11 }
  0x42   :  { %2300 = shalt.err (!%p2297_p1)
}
  0x43   :  { %112 = dma.hbm_to_vmem [thread:$0]  %s2519_s10, 4096, %s107_s22, [#allocation17], %s2333_s13, %s2333_s13, %s2334_s20  }
  0x44   :  { %2321 = dma.done.wait [#allocation8], 4096  }
  0x45   :  { %2322 = vsyncadd [#allocation8], 4294963200 }
  0x46   :  { %2323 = dma.done.wait [#allocation11], 8192  }
  0x47   :  { %2324 = vsyncadd [#allocation11], 4294959104 }
  0x48   :  { %2325 = dma.done.wait [#allocation14], 8192  }
  0x49   :  { %2326 = vsyncadd [#allocation14], 4294959104 }
  0x4a   :  { %2327 = dma.done.wait [#allocation17], 4096  }
  0x4b   :  { %2328 = vsyncadd [#allocation17], 4294963200  ;;  %v1891_v2 = vld [vmem:[#allocation7 + $0x74] ss:$8 sps:$4 sm:$0xff]   ;;  %v1893_v3 = vld [vmem:[#allocation7 + $0x70] ss:$8 sps:$4 sm:$0xff]   ;;  %v158_v9 = vlaneseq }
  0x4c   :  { %380 = vmatprep.subr.bf16.mxu0 %v1891_v2  ;;  %v1894_v4 = vld [vmem:[#allocation7 + $0x64] ss:$8 sps:$4 sm:$0xff]   ;;  %v1896_v5 = vld [vmem:[#allocation7 + $0x60] ss:$8 sps:$4 sm:$0xff]   ;;  %v1897_v6 = vld [vmem:[#allocation7 + $0x54] ss:$8 sps:$4 sm:$0xff]  }
  0x4d   :  { %381 = vmatpush1.bf16.msra.mxu0 %v1893_v3  ;;  %v1899_v7 = vld [vmem:[#allocation7 + $0x50] ss:$8 sps:$4 sm:$0xff]   ;;  %v1900_v8 = vld [vmem:[#allocation7 + $0x44] ss:$8 sps:$4 sm:$0xff]   ;;  %v1902_v10 = vld [vmem:[#allocation7 + $0x40] ss:$8 sps:$4 sm:$0xff]  }
  0x4e   :  { %382 = vmatprep.subr.bf16.mxu0 %v1894_v4  ;;  %v1903_v11 = vld [vmem:[#allocation7 + $0x34] ss:$8 sps:$4 sm:$0xff]   ;;  %v159_v12 = vand.u32 127, %v158_v9  ;;  %v1905_v13 = vld [vmem:[#allocation7 + $0x30] ss:$8 sps:$4 sm:$0xff]   ;;  %v2339_v27 = vmov 0.0  }
  0x4f   :  { %v1906_v14 = vld [vmem:[#allocation7 + $0x24] ss:$8 sps:$4 sm:$0xff]   ;;  %v1908_v16 = vld [vmem:[#allocation7 + $0x20] ss:$8 sps:$4 sm:$0xff]   ;;  %v1909_v17 = vld [vmem:[#allocation7 + $0x14] ss:$8 sps:$4 sm:$0xff]  }
  0x50   :  { %v160_v15 = vadd.s32 128, %v159_v12  ;;  %v1911_v18 = vld [vmem:[#allocation7 + $0x10] ss:$8 sps:$4 sm:$0xff]   ;;  %v133_v19 = vld [vmem:[%s2521_s12] sm:$0xf] }
  0x51   :  { %383 = vmatpush1.bf16.msra.mxu0 %v1896_v5  ;;  %v1686_v20 = vld [vmem:[%s2521_s12 + $0x4] sm:$0xf]  ;;  %144 = vst [vmem:[#allocation19] sm:$0xf] %v133_v19  ;;  %v1941_v22 = vld [vmem:[#allocation10 + $0x74] ss:$8 sps:$4 sm:$0xff]  }
  0x52   :  { %384 = vmatprep.subr.bf16.mxu0 %v1897_v6  ;;  %vm161_vm0 = vcmp.lt.s32.totalorder %v160_v15, 150  ;;  %v156_v21 = vunpack.c.l.bf16 %v1686_v20  ;;  %v1943_v23 = vld [vmem:[#allocation10 + $0x70] ss:$8 sps:$4 sm:$0xff]   ;;  %v1912_v24 = vld [vmem:[#allocation7 + $0x4] ss:$8 sps:$4 sm:$0xff]   ;;  %629 = vmatprep.subr.bf16.mxu1 %v1941_v22 }
  0x53   :  { %v1944_v26 = vld [vmem:[#allocation10 + $0x64] ss:$8 sps:$4 sm:$0xff]   ;;  %630 = vmatpush1.bf16.msra.mxu1 %v1943_v23  ;;  %v1946_v29 = vld [vmem:[#allocation10 + $0x60] ss:$8 sps:$4 sm:$0xff]   ;;  %v1947_v30 = vld [vmem:[#allocation10 + $0x54] ss:$8 sps:$4 sm:$0xff]  }
  0x54   :  { %v162_v25 = vsel %vm161_vm0, %v156_v21, %v2419_v1  ;;  %631 = vmatprep.subr.bf16.mxu1 %v1944_v26  ;;  %v1914_v31 = vld [vmem:[#allocation7] ss:$8 sps:$4 sm:$0xff]   ;;  %v1915_v32 = vld [vmem:[#allocation7 + $0xf4] ss:$8 sps:$4 sm:$0xff]   ;;  %v1949_v33 = vld [vmem:[#allocation10 + $0x50] ss:$8 sps:$4 sm:$0xff]  }
  0x55   :  { %385 = vmatpush1.bf16.msra.mxu0 %v1899_v7  ;;  %v164_v28 = vpack.c.bf16 %v2339_v27, %v162_v25  ;;  %v1950_v34 = vld [vmem:[#allocation10 + $0x44] ss:$8 sps:$4 sm:$0xff]   ;;  %v1917_v35 = vld [vmem:[#allocation7 + $0xf0] ss:$8 sps:$4 sm:$0xff]   ;;  %v1952_v37 = vld [vmem:[#allocation10 + $0x40] ss:$8 sps:$4 sm:$0xff]  }
  0x56   :  { %386 = vmatprep.subr.bf16.mxu0 %v1900_v8  ;;  %v1918_v36 = vld [vmem:[#allocation7 + $0xe4] ss:$8 sps:$4 sm:$0xff]   ;;  %v1953_v38 = vld [vmem:[#allocation10 + $0x34] ss:$8 sps:$4 sm:$0xff]   ;;  %v1920_v40 = vld [vmem:[#allocation7 + $0xe0] ss:$8 sps:$4 sm:$0xff]  }
  0x57   :  { %167 = vst [vmem:[#allocation19 + $0x4] sm:$0xf] %v164_v28  ;;  %632 = vmatpush1.bf16.msra.mxu1 %v1946_v29  ;;  %v1921_v42 = vld [vmem:[#allocation7 + $0xd4] ss:$8 sps:$4 sm:$0xff]   ;;  %v1955_v43 = vld [vmem:[#allocation10 + $0x30] ss:$8 sps:$4 sm:$0xff]  }
  0x58   :  { %633 = vmatprep.subr.bf16.mxu1 %v1947_v30  ;;  %v1956_v44 = vld [vmem:[#allocation10 + $0x24] ss:$8 sps:$4 sm:$0xff]   ;;  %v1923_v45 = vld [vmem:[#allocation7 + $0xd0] ss:$8 sps:$4 sm:$0xff]   ;;  %v1958_v47 = vld [vmem:[#allocation10 + $0x20] ss:$8 sps:$4 sm:$0xff]  }
  0x59   :  { %387 = vmatpush1.bf16.msra.mxu0 %v1902_v10  ;;  %v1924_v46 = vld [vmem:[#allocation7 + $0xc4] ss:$8 sps:$4 sm:$0xff]   ;;  %v1926_v48 = vld [vmem:[#allocation7 + $0xc0] ss:$8 sps:$4 sm:$0xff]   ;;  %v1959_v49 = vld [vmem:[#allocation10 + $0x14] ss:$8 sps:$4 sm:$0xff]  }
  0x5a   :  { %388 = vmatprep.subr.bf16.mxu0 %v1903_v11  ;;  %v1927_v50 = vld [vmem:[#allocation7 + $0xb4] ss:$8 sps:$4 sm:$0xff]   ;;  %v1961_v51 = vld [vmem:[#allocation10 + $0x10] ss:$8 sps:$4 sm:$0xff]   ;;  %v1962_v52 = vld [vmem:[#allocation10 + $0x4] ss:$8 sps:$4 sm:$0xff]  }
  0x5b   :  { %634 = vmatpush1.bf16.msra.mxu1 %v1949_v33  ;;  %v1929_v53 = vld [vmem:[#allocation7 + $0xb0] ss:$8 sps:$4 sm:$0xff]   ;;  %v1930_v54 = vld [vmem:[#allocation7 + $0xa4] ss:$8 sps:$4 sm:$0xff]   ;;  %v1964_v55 = vld [vmem:[#allocation10] ss:$8 sps:$4 sm:$0xff]  }
  0x5c   :  { %635 = vmatprep.subr.bf16.mxu1 %v1950_v34  ;;  %v1965_v56 = vld [vmem:[#allocation10 + $0xf4] ss:$8 sps:$4 sm:$0xff]   ;;  %v1932_v57 = vld [vmem:[#allocation7 + $0xa0] ss:$8 sps:$4 sm:$0xff]   ;;  %v1967_v59 = vld [vmem:[#allocation10 + $0xf0] ss:$8 sps:$4 sm:$0xff]  }
  0x5d   :  { %389 = vmatpush1.bf16.msra.mxu0 %v1905_v13  ;;  %v1933_v58 = vld [vmem:[#allocation7 + $0x94] ss:$8 sps:$4 sm:$0xff]   ;;  %v1968_v60 = vld [vmem:[#allocation10 + $0xe4] ss:$8 sps:$4 sm:$0xff]   ;;  %v1935_v61 = vld [vmem:[#allocation7 + $0x90] ss:$8 sps:$4 sm:$0xff]  }
  0x5e   :  { %390 = vmatprep.subr.bf16.mxu0 %v1906_v14  ;;  %v2465_v39 = vld [vmem:[#allocation19] sm:$0xff]  ;;  %v1936_v62 = vld [vmem:[#allocation7 + $0x84] ss:$8 sps:$4 sm:$0xff]   ;;  %v1970_v63 = vld [vmem:[#allocation10 + $0xe0] ss:$8 sps:$4 sm:$0xff]  }
  0x5f   :  { %v1688_v41 = vcombine.high %v2465_v39, %v2465_v39  ;;  %636 = vmatpush1.bf16.msra.mxu1 %v1952_v37  ;;  %v1971_v0 = vld [vmem:[#allocation10 + $0xd4] ss:$8 sps:$4 sm:$0xff]   ;;  %v1938_v1 = vld [vmem:[#allocation7 + $0x80] ss:$8 sps:$4 sm:$0xff]   ;;  %v1973_v2 = vld [vmem:[#allocation10 + $0xd0] ss:$8 sps:$4 sm:$0xff]   ;;  %v1687_v4 = vcombine.low %v2465_v39, %v2465_v39 }
  0x60   :  { %637 = vmatprep.subr.bf16.mxu1 %v1953_v38  ;;  %v1974_v3 = vld [vmem:[#allocation10 + $0xc4] ss:$8 sps:$4 sm:$0xff]   ;;  %v1976_v5 = vld [vmem:[#allocation10 + $0xc0] ss:$8 sps:$4 sm:$0xff]   ;;  %v1977_v6 = vld [vmem:[#allocation10 + $0xb4] ss:$8 sps:$4 sm:$0xff]  }
  0x61   :  { %391 = vmatpush1.bf16.msra.mxu0 %v1908_v16  ;;  %412 = vmatprep.mubr.bf16.mxu0 %v1688_v41  ;;  %v1979_v7 = vld [vmem:[#allocation10 + $0xb0] ss:$8 sps:$4 sm:$0xff]   ;;  %v1980_v8 = vld [vmem:[#allocation10 + $0xa4] ss:$8 sps:$4 sm:$0xff]   ;;  %v1982_v10 = vld [vmem:[#allocation10 + $0xa0] ss:$8 sps:$4 sm:$0xff]  }
  0x62   :  { %392 = vmatprep.subr.bf16.mxu0 %v1909_v17  ;;  %v1983_v11 = vld [vmem:[#allocation10 + $0x94] ss:$8 sps:$4 sm:$0xff]   ;;  %v1985_v12 = vld [vmem:[#allocation10 + $0x90] ss:$8 sps:$4 sm:$0xff]   ;;  %v1986_v13 = vld [vmem:[#allocation10 + $0x84] ss:$8 sps:$4 sm:$0xff]  }
  0x63   :  { %638 = vmatpush1.bf16.msra.mxu1 %v1955_v43  ;;  %v1988_v14 = vld [vmem:[#allocation10 + $0x80] ss:$8 sps:$4 sm:$0xff]   ;;  %v1989_v15 = vld [vmem:[#allocation12 + $0x70] ss:$8 sps:$4 sm:$0xff]   ;;  %v1991_v16 = vld [vmem:[#allocation12 + $0x74] ss:$8 sps:$4 sm:$0xff]  }
  0x64   :  { %639 = vmatprep.subr.bf16.mxu1 %v1956_v44  ;;  %v1994_v17 = vld [vmem:[#allocation12 + $0x64] ss:$8 sps:$4 sm:$0xff]   ;;  %v1997_v19 = vld [vmem:[#allocation12 + $0x54] ss:$8 sps:$4 sm:$0xff]   ;;  %v1995_v20 = vld [vmem:[#allocation12 + $0x50] ss:$8 sps:$4 sm:$0xff]  }
  0x65   :  { %393 = vmatpush1.bf16.msra.mxu0 %v1911_v18  ;;  %v1992_v18 = vld [vmem:[#allocation12 + $0x60] ss:$8 sps:$4 sm:$0xff]   ;;  %v2000_v21 = vld [vmem:[#allocation12 + $0x44] ss:$8 sps:$4 sm:$0xff]   ;;  %v2003_v23 = vld [vmem:[#allocation12 + $0x34] ss:$8 sps:$4 sm:$0xff]  }
  0x66   :  { %394 = vmatprep.subr.bf16.mxu0 %v1912_v24  ;;  %v1998_v22 = vld [vmem:[#allocation12 + $0x40] ss:$8 sps:$4 sm:$0xff]   ;;  %v2001_v24 = vld [vmem:[#allocation12 + $0x30] ss:$8 sps:$4 sm:$0xff]   ;;  %v2006_v25 = vld [vmem:[#allocation12 + $0x24] ss:$8 sps:$4 sm:$0xff]  }
  0x67   :  { %640 = vmatpush1.bf16.msra.mxu1 %v1958_v47  ;;  %v2004_v26 = vld [vmem:[#allocation12 + $0x20] ss:$8 sps:$4 sm:$0xff]   ;;  %v2009_v27 = vld [vmem:[#allocation12 + $0x14] ss:$8 sps:$4 sm:$0xff]   ;;  %v2007_v28 = vld [vmem:[#allocation12 + $0x10] ss:$8 sps:$4 sm:$0xff]  }
  0x68   :  { %641 = vmatprep.subr.bf16.mxu1 %v1959_v49  ;;  %v2012_v29 = vld [vmem:[#allocation12 + $0x4] ss:$8 sps:$4 sm:$0xff]   ;;  %v2010_v30 = vld [vmem:[#allocation12] ss:$8 sps:$4 sm:$0xff]   ;;  %v2027_v39 = vld [vmem:[#allocation12 + $0xb4] ss:$8 sps:$4 sm:$0xff]  }
  0x69   :  { %395 = vmatpush1.bf16.msra.mxu0 %v1914_v31  ;;  %v2015_v31 = vld [vmem:[#allocation12 + $0xf4] ss:$8 sps:$4 sm:$0xff]   ;;  %v2018_v33 = vld [vmem:[#allocation12 + $0xe4] ss:$8 sps:$4 sm:$0xff]   ;;  %v2016_v34 = vld [vmem:[#allocation12 + $0xe0] ss:$8 sps:$4 sm:$0xff]  }
  0x6a   :  { %396 = vmatprep.subr.bf16.mxu0 %v1915_v32  ;;  %v2013_v32 = vld [vmem:[#allocation12 + $0xf0] ss:$8 sps:$4 sm:$0xff]   ;;  %v2024_v37 = vld [vmem:[#allocation12 + $0xc4] ss:$8 sps:$4 sm:$0xff]   ;;  %v2022_v38 = vld [vmem:[#allocation12 + $0xc0] ss:$8 sps:$4 sm:$0xff]  }
  0x6b   :  { %642 = vmatpush1.bf16.msra.mxu1 %v1961_v51  ;;  %v2030_v41 = vld [vmem:[#allocation12 + $0xa4] ss:$8 sps:$4 sm:$0xff]   ;;  %v204_v43 = vshrl.u32 %v158_v9, 7 }
  0x6c   :  { %643 = vmatprep.subr.bf16.mxu1 %v1962_v52 }
  0x6d   :  { %397 = vmatpush2.bf16.msra.mxu0 %v1917_v35  ;;  %v2021_v35 = vld [vmem:[#allocation12 + $0xd4] ss:$8 sps:$4 sm:$0xff]   ;;  %v2472_v44 = vsub.s32 0, %v204_v43 }
  0x6e   :  { %398 = vmatprep.subr.bf16.mxu0 %v1918_v36  ;;  %v2019_v36 = vld [vmem:[#allocation12 + $0xd0] ss:$8 sps:$4 sm:$0xff]  }
  0x6f   :  { %644 = vmatpush1.bf16.msra.mxu1 %v1964_v55 }
  0x70   :  { %645 = vmatprep.subr.bf16.mxu1 %v1965_v56 }
  0x71   :  { %399 = vmatpush2.bf16.msra.mxu0 %v1920_v40  ;;  %v2025_v40 = vld [vmem:[#allocation12 + $0xb0] ss:$8 sps:$4 sm:$0xff]  }
  0x72   :  { %400 = vmatprep.subr.bf16.mxu0 %v1921_v42  ;;  %v2028_v42 = vld [vmem:[#allocation12 + $0xa0] ss:$8 sps:$4 sm:$0xff]  }
  0x73   :  { %646 = vmatpush2.bf16.msra.mxu1 %v1967_v59  ;;  %v2031_v59 = vld [vmem:[#allocation12 + $0x90] ss:$8 sps:$4 sm:$0xff]  }
  0x74   :  { %647 = vmatprep.subr.bf16.mxu1 %v1968_v60  ;;  %v2036_v60 = vld [vmem:[#allocation12 + $0x84] ss:$8 sps:$4 sm:$0xff]  }
  0x75   :  { %401 = vmatpush2.bf16.msra.mxu0 %v1923_v45  ;;  %v201_v45 = vld [vmem:[%s2510_s1] sm:$0x3] }
  0x76   :  { %402 = vmatprep.subr.bf16.mxu0 %v1924_v46  ;;  %v2477_v46 = vsub.s32 1, %v204_v43  ;;  %v206_v47 = vrot.slane %v201_v45, %v2472_v44  ;;  %v2082_v43 = vld [vmem:[#allocation13 + $0x80] ss:$8 sps:$4 sm:$0xff]  }
  0x77   :  { %648 = vmatpush2.bf16.msra.mxu1 %v1970_v63  ;;  %v2039_v63 = vld [vmem:[#allocation13 + $0x74] ss:$8 sps:$4 sm:$0xff]  }
  0x78   :  { %649 = vmatprep.subr.bf16.mxu1 %v1971_v0  ;;  %v2042_v0 = vld [vmem:[#allocation13 + $0x64] ss:$8 sps:$4 sm:$0xff]  }
  0x79   :  { %403 = vmatpush2.bf16.msra.mxu0 %v1926_v48  ;;  %v210_v48 = vrot.slane %v201_v45, %v2477_v46  ;;  %v2085_v45 = vld [vmem:[#allocation15 + $0x70] ss:$8 sps:$4 sm:$0xff]  }
  0x7a   :  { %404 = vmatprep.subr.bf16.mxu0 %v1927_v50 }
  0x7b   :  { %650 = vmatpush2.bf16.msra.mxu1 %v1973_v2  ;;  %v2045_v2 = vld [vmem:[#allocation13 + $0x54] ss:$8 sps:$4 sm:$0xff]  }
  0x7c   :  { %651 = vmatprep.subr.bf16.mxu1 %v1974_v3  ;;  %v2043_v3 = vld [vmem:[#allocation13 + $0x50] ss:$8 sps:$4 sm:$0xff]  }
  0x7d   :  { %405 = vmatpush2.bf16.msra.mxu0 %v1929_v53 }
  0x7e   :  { %406 = vmatprep.subr.bf16.mxu0 %v1930_v54 }
  0x7f   :  { %652 = vmatpush2.bf16.msra.mxu1 %v1976_v5  ;;  %v2046_v5 = vld [vmem:[#allocation13 + $0x40] ss:$8 sps:$4 sm:$0xff]  }
  0x80   :  { %653 = vmatprep.subr.bf16.mxu1 %v1977_v6  ;;  %v2051_v6 = vld [vmem:[#allocation13 + $0x34] ss:$8 sps:$4 sm:$0xff]  }
  0x81   :  { %407 = vmatpush2.bf16.msra.mxu0 %v1932_v57 }
  0x82   :  { %408 = vmatprep.subr.bf16.mxu0 %v1933_v58  ;;  %v2033_v58 = vld [vmem:[#allocation12 + $0x94] ss:$8 sps:$4 sm:$0xff]  }
  0x83   :  { %654 = vmatpush2.bf16.msra.mxu1 %v1979_v7  ;;  %v2049_v7 = vld [vmem:[#allocation13 + $0x30] ss:$8 sps:$4 sm:$0xff]  }
  0x84   :  { %655 = vmatprep.subr.bf16.mxu1 %v1980_v8  ;;  %v2054_v8 = vld [vmem:[#allocation13 + $0x24] ss:$8 sps:$4 sm:$0xff]  }
  0x85   :  { %409 = vmatpush2.bf16.msra.mxu0 %v1935_v61  ;;  %v2034_v61 = vld [vmem:[#allocation12 + $0x80] ss:$8 sps:$4 sm:$0xff]  }
  0x86   :  { %410 = vmatprep.subr.bf16.mxu0 %v1936_v62  ;;  %v2037_v62 = vld [vmem:[#allocation13 + $0x70] ss:$8 sps:$4 sm:$0xff]  }
  0x87   :  { %656 = vmatpush2.bf16.msra.mxu1 %v1982_v10  ;;  %v2052_v10 = vld [vmem:[#allocation13 + $0x20] ss:$8 sps:$4 sm:$0xff]  }
  0x88   :  { %657 = vmatprep.subr.bf16.mxu1 %v1983_v11  ;;  %v2057_v11 = vld [vmem:[#allocation13 + $0x14] ss:$8 sps:$4 sm:$0xff]  }
  0x89   :  { %411 = vmatpush2.bf16.msra.mxu0 %v1938_v1  ;;  %v2040_v1 = vld [vmem:[#allocation13 + $0x60] ss:$8 sps:$4 sm:$0xff]  }
  0x8a   :  { %878 = vmatprep.subr.bf16.mxu0 %v1991_v16  ;;  %v2061_v16 = vld [vmem:[#allocation13 + $0xf0] ss:$8 sps:$4 sm:$0xff]  }
  0x8b   :  { %658 = vmatpush2.bf16.msra.mxu1 %v1985_v12  ;;  %v2055_v12 = vld [vmem:[#allocation13 + $0x10] ss:$8 sps:$4 sm:$0xff]  }
  0x8c   :  { %413 = vmatmul.mubr.bf16.vlgmr.msra.gmra.mxu0 %v1687_v4  ;;  %659 = vmatprep.subr.bf16.mxu1 %v1986_v13  ;;  %v2048_v4 = vld [vmem:[#allocation13 + $0x44] ss:$8 sps:$4 sm:$0xff]  }
  0x8d   :  { %879 = vmatpush1.bf16.msra.mxu0 %v1989_v15  ;;  %v2060_v13 = vld [vmem:[#allocation13 + $0x4] ss:$8 sps:$4 sm:$0xff]   ;;  %v2063_v15 = vld [vmem:[#allocation13 + $0xf4] ss:$8 sps:$4 sm:$0xff]  }
  0x8e   :  { %880 = vmatprep.subr.bf16.mxu0 %v1994_v17  ;;  %v2066_v17 = vld [vmem:[#allocation13 + $0xe4] ss:$8 sps:$4 sm:$0xff]  }
  0x8f   :  { %660 = vmatpush2.bf16.msra.mxu1 %v1988_v14  ;;  %v2058_v14 = vld [vmem:[#allocation13] ss:$8 sps:$4 sm:$0xff]  }
  0x90   :  { %1127 = vmatprep.subr.bf16.mxu1 %v2039_v63  ;;  %v2114_v63 = vld [vmem:[#allocation15 + $0xe4] ss:$8 sps:$4 sm:$0xff]  }
  0x91   :  { %881 = vmatpush1.bf16.msra.mxu0 %v1992_v18  ;;  %v2064_v18 = vld [vmem:[#allocation13 + $0xe0] ss:$8 sps:$4 sm:$0xff]  }
  0x92   :  { %882 = vmatprep.subr.bf16.mxu0 %v1997_v19  ;;  %v2069_v19 = vld [vmem:[#allocation13 + $0xd4] ss:$8 sps:$4 sm:$0xff]  }
  0x95   :  { %883 = vmatpush1.bf16.msra.mxu0 %v1995_v20  ;;  %v2067_v20 = vld [vmem:[#allocation13 + $0xd0] ss:$8 sps:$4 sm:$0xff]  }
  0x96   :  { %884 = vmatprep.subr.bf16.mxu0 %v2000_v21  ;;  %v2072_v21 = vld [vmem:[#allocation13 + $0xc4] ss:$8 sps:$4 sm:$0xff]  }
  0x99   :  { %885 = vmatpush1.bf16.msra.mxu0 %v1998_v22  ;;  %v2070_v22 = vld [vmem:[#allocation13 + $0xc0] ss:$8 sps:$4 sm:$0xff]  }
  0x9a   :  { %886 = vmatprep.subr.bf16.mxu0 %v2003_v23  ;;  %v2075_v23 = vld [vmem:[#allocation13 + $0xb4] ss:$8 sps:$4 sm:$0xff]  }
  0x9d   :  { %887 = vmatpush1.bf16.msra.mxu0 %v2001_v24  ;;  %v2073_v24 = vld [vmem:[#allocation13 + $0xb0] ss:$8 sps:$4 sm:$0xff]  }
  0x9e   :  { %888 = vmatprep.subr.bf16.mxu0 %v2006_v25  ;;  %v2078_v25 = vld [vmem:[#allocation13 + $0xa4] ss:$8 sps:$4 sm:$0xff]  }
  0xa1   :  { %889 = vmatpush1.bf16.msra.mxu0 %v2004_v26  ;;  %v2076_v26 = vld [vmem:[#allocation13 + $0xa0] ss:$8 sps:$4 sm:$0xff]  }
  0xa2   :  { %890 = vmatprep.subr.bf16.mxu0 %v2009_v27  ;;  %v457_v27 = vld [vmem:[%s2512_s3] sm:$0x3] }
  0xa5   :  { %891 = vmatpush1.bf16.msra.mxu0 %v2007_v28  ;;  %v462_v28 = vrot.slane %v457_v27, %v2472_v44 }
  0xa6   :  { %892 = vmatprep.subr.bf16.mxu0 %v2012_v29  ;;  %v466_v29 = vrot.slane %v457_v27, %v2477_v46  ;;  %v2133_v27 = vld [vmem:[#allocation16 + $0x70] ss:$8 sps:$4 sm:$0xff]  }
  0xa9   :  { %893 = vmatpush1.bf16.msra.mxu0 %v2010_v30 }
  0xaa   :  { %894 = vmatprep.subr.bf16.mxu0 %v2015_v31 }
  0xad   :  { %895 = vmatpush2.bf16.msra.mxu0 %v2013_v32 }
  0xae   :  { %896 = vmatprep.subr.bf16.mxu0 %v2018_v33 }
  0xb1   :  { %897 = vmatpush2.bf16.msra.mxu0 %v2016_v34 }
  0xb2   :  { %898 = vmatprep.subr.bf16.mxu0 %v2021_v35 }
  0xb5   :  { %899 = vmatpush2.bf16.msra.mxu0 %v2019_v36 }
  0xb6   :  { %900 = vmatprep.subr.bf16.mxu0 %v2024_v37 }
  0xb9   :  { %901 = vmatpush2.bf16.msra.mxu0 %v2022_v38 }
  0xba   :  { %902 = vmatprep.subr.bf16.mxu0 %v2027_v39 }
  0xbd   :  { %903 = vmatpush2.bf16.msra.mxu0 %v2025_v40  ;;  %v2081_v40 = vld [vmem:[#allocation13 + $0x94] ss:$8 sps:$4 sm:$0xff]  }
  0xbe   :  { %904 = vmatprep.subr.bf16.mxu0 %v2030_v41  ;;  %v2079_v41 = vld [vmem:[#allocation13 + $0x90] ss:$8 sps:$4 sm:$0xff]  }
  0xc1   :  { %905 = vmatpush2.bf16.msra.mxu0 %v2028_v42  ;;  %v2084_v42 = vld [vmem:[#allocation13 + $0x84] ss:$8 sps:$4 sm:$0xff]  }
  0xc2   :  { %906 = vmatprep.subr.bf16.mxu0 %v2033_v58  ;;  %v2103_v58 = vld [vmem:[#allocation15 + $0x10] ss:$8 sps:$4 sm:$0xff]  }
  0xc5   :  { %907 = vmatpush2.bf16.msra.mxu0 %v2031_v59  ;;  %v2108_v59 = vld [vmem:[#allocation15 + $0x4] ss:$8 sps:$4 sm:$0xff]  }
  0xc6   :  { %908 = vmatprep.subr.bf16.mxu0 %v2036_v60  ;;  %v2106_v60 = vld [vmem:[#allocation15] ss:$8 sps:$4 sm:$0xff]  }
  0xc9   :  { %909 = vmatpush2.bf16.msra.mxu0 %v2034_v61  ;;  %v2111_v61 = vld [vmem:[#allocation15 + $0xf4] ss:$8 sps:$4 sm:$0xff]  }
 0x14c   :  { %v414_v49 = vpop.f32.mrf.mxu0 }
 0x14d   :  { %v415_v50 = vadd.f32 %v414_v49, %v206_v47  ;;  %v2087_v47 = vld [vmem:[#allocation15 + $0x74] ss:$8 sps:$4 sm:$0xff]   ;;  %v2088_v49 = vld [vmem:[#allocation15 + $0x60] ss:$8 sps:$4 sm:$0xff]  }
 0x14e   :  { %v416_v51 = vpop.f32.mrf.mxu0  ;;  %1376 = vmatprep.subr.bf16.mxu0 %v2087_v47  ;;  %v2162_v47 = vld [vmem:[#allocation16 + $0xe4] ss:$8 sps:$4 sm:$0xff]  }
 0x14f   :  { %v417_v52 = vadd.f32 %v416_v51, %v210_v48  ;;  %v421_v53 = vmax.f32 %v415_v50, 0.0  ;;  %v2090_v48 = vld [vmem:[#allocation15 + $0x64] ss:$8 sps:$4 sm:$0xff]   ;;  %v2093_v50 = vld [vmem:[#allocation15 + $0x54] ss:$8 sps:$4 sm:$0xff]  }
 0x150   :  { %v418_v54 = vpop.f32.mrf.mxu0  ;;  %v2091_v51 = vld [vmem:[#allocation15 + $0x50] ss:$8 sps:$4 sm:$0xff]  }
 0x151   :  { %v422_v55 = vmax.f32 %v417_v52, 0.0  ;;  %v423_v57 = vpack.c.bf16 %v421_v53, %v421_v53  ;;  %v2096_v52 = vld [vmem:[#allocation15 + $0x44] ss:$8 sps:$4 sm:$0xff]   ;;  %v2094_v53 = vld [vmem:[#allocation15 + $0x40] ss:$8 sps:$4 sm:$0xff]  }
 0x152   :  { %v419_v9 = vpop.f32.mrf.mxu0  ;;  %v2099_v54 = vld [vmem:[#allocation15 + $0x34] ss:$8 sps:$4 sm:$0xff]  }
 0x153   :  { %v424_v56 = vpack.c.bf16 %v422_v55, %v422_v55  ;;  %v2097_v55 = vld [vmem:[#allocation15 + $0x30] ss:$8 sps:$4 sm:$0xff]   ;;  %v2102_v9 = vld [vmem:[#allocation15 + $0x24] ss:$8 sps:$4 sm:$0xff]  }
 0x155   :  { %661 = vmatprep.mubr.bf16.mxu1 %v424_v56  ;;  %v2100_v56 = vld [vmem:[#allocation15 + $0x20] ss:$8 sps:$4 sm:$0xff]  }
 0x156   :  { %662 = vmatmul.mubr.bf16.vlgmr.msra.gmra.mxu1 %v423_v57  ;;  %v2105_v57 = vld [vmem:[#allocation15 + $0x14] ss:$8 sps:$4 sm:$0xff]  }
 0x157   :  { %1128 = vmatpush1.bf16.msra.mxu1 %v2037_v62  ;;  %v2109_v62 = vld [vmem:[#allocation15 + $0xf0] ss:$8 sps:$4 sm:$0xff]  }
 0x158   :  { %1129 = vmatprep.subr.bf16.mxu1 %v2042_v0  ;;  %v2112_v0 = vld [vmem:[#allocation15 + $0xe0] ss:$8 sps:$4 sm:$0xff]  }
 0x15b   :  { %1130 = vmatpush1.bf16.msra.mxu1 %v2040_v1  ;;  %v2117_v1 = vld [vmem:[#allocation15 + $0xd4] ss:$8 sps:$4 sm:$0xff]  }
 0x15c   :  { %1131 = vmatprep.subr.bf16.mxu1 %v2045_v2  ;;  %v2115_v2 = vld [vmem:[#allocation15 + $0xd0] ss:$8 sps:$4 sm:$0xff]  }
 0x15f   :  { %1132 = vmatpush1.bf16.msra.mxu1 %v2043_v3  ;;  %v2120_v3 = vld [vmem:[#allocation15 + $0xc4] ss:$8 sps:$4 sm:$0xff]  }
 0x160   :  { %1133 = vmatprep.subr.bf16.mxu1 %v2048_v4  ;;  %v2118_v4 = vld [vmem:[#allocation15 + $0xc0] ss:$8 sps:$4 sm:$0xff]  }
 0x163   :  { %1134 = vmatpush1.bf16.msra.mxu1 %v2046_v5  ;;  %v2123_v5 = vld [vmem:[#allocation15 + $0xb4] ss:$8 sps:$4 sm:$0xff]  }
 0x164   :  { %1135 = vmatprep.subr.bf16.mxu1 %v2051_v6  ;;  %v2121_v6 = vld [vmem:[#allocation15 + $0xb0] ss:$8 sps:$4 sm:$0xff]  }
 0x167   :  { %1136 = vmatpush1.bf16.msra.mxu1 %v2049_v7  ;;  %v2126_v7 = vld [vmem:[#allocation15 + $0xa4] ss:$8 sps:$4 sm:$0xff]  }
 0x168   :  { %1137 = vmatprep.subr.bf16.mxu1 %v2054_v8  ;;  %v2124_v8 = vld [vmem:[#allocation15 + $0xa0] ss:$8 sps:$4 sm:$0xff]  }
 0x16b   :  { %1138 = vmatpush1.bf16.msra.mxu1 %v2052_v10  ;;  %v706_v10 = vld [vmem:[%s2514_s5] sm:$0x3] }
 0x16c   :  { %1139 = vmatprep.subr.bf16.mxu1 %v2057_v11  ;;  %v711_v11 = vrot.slane %v706_v10, %v2472_v44 }
 0x16f   :  { %1140 = vmatpush1.bf16.msra.mxu1 %v2055_v12  ;;  %v715_v12 = vrot.slane %v706_v10, %v2477_v46  ;;  %v1204_v10 = vld [vmem:[%s2518_s9] sm:$0x3]  ;;  %s2340_s9 = smov [#allocation18]  }
 0x170   :  { %1141 = vmatprep.subr.bf16.mxu1 %v2060_v13  ;;  %s1674_s16 = sshll.u32 %s2340_s9, 4  ;;  %s1675_s16 = int_to_ptr.vmem [resolvable:$true] %s1674_s16 }
 0x171   :  { %s2301_s17 = scalar_lea.vmem %s1675_s16, 256  ;;  %p2306_p3 = scmp.lt.s32.totalorder %s1675_s16, %s1675_s16 }
 0x172   :  { %p2302_p2 = scmp.ne.s32.totalorder %s1675_s16, %s2301_s17  ;;  %p2307_p4 = scmp.lt.s32.totalorder %s2301_s17, %s2301_s17 }
 0x173   :  { %1142 = vmatpush1.bf16.msra.mxu1 %v2058_v14 }
 0x174   :  { %1143 = vmatprep.subr.bf16.mxu1 %v2063_v15  ;;  %p2308_p5 = por %p2307_p4, %p2306_p3 }
 0x176   :  { %p2309_p6 = pnand %p2308_p5, %p2302_p2 }
 0x177   :  { %1144 = vmatpush2.bf16.msra.mxu1 %v2061_v16 }
 0x178   :  { %1145 = vmatprep.subr.bf16.mxu1 %v2066_v17 }
 0x17b   :  { %1146 = vmatpush2.bf16.msra.mxu1 %v2064_v18 }
 0x17c   :  { %1147 = vmatprep.subr.bf16.mxu1 %v2069_v19 }
 0x17f   :  { %1148 = vmatpush2.bf16.msra.mxu1 %v2067_v20 }
 0x180   :  { %1149 = vmatprep.subr.bf16.mxu1 %v2072_v21 }
 0x183   :  { %1150 = vmatpush2.bf16.msra.mxu1 %v2070_v22 }
 0x184   :  { %1151 = vmatprep.subr.bf16.mxu1 %v2075_v23  ;;  %v2129_v23 = vld [vmem:[#allocation15 + $0x94] ss:$8 sps:$4 sm:$0xff]  }
 0x187   :  { %1152 = vmatpush2.bf16.msra.mxu1 %v2073_v24  ;;  %v2127_v24 = vld [vmem:[#allocation15 + $0x90] ss:$8 sps:$4 sm:$0xff]  }
 0x188   :  { %1153 = vmatprep.subr.bf16.mxu1 %v2078_v25  ;;  %v2132_v25 = vld [vmem:[#allocation15 + $0x84] ss:$8 sps:$4 sm:$0xff]  }
 0x18b   :  { %1154 = vmatpush2.bf16.msra.mxu1 %v2076_v26  ;;  %v2130_v26 = vld [vmem:[#allocation15 + $0x80] ss:$8 sps:$4 sm:$0xff]  }
 0x18c   :  { %1155 = vmatprep.subr.bf16.mxu1 %v2081_v40  ;;  %v2151_v40 = vld [vmem:[#allocation16 + $0x10] ss:$8 sps:$4 sm:$0xff]  }
 0x18f   :  { %1156 = vmatpush2.bf16.msra.mxu1 %v2079_v41  ;;  %v2156_v41 = vld [vmem:[#allocation16 + $0x4] ss:$8 sps:$4 sm:$0xff]  }
 0x190   :  { %1157 = vmatprep.subr.bf16.mxu1 %v2084_v42  ;;  %v2154_v42 = vld [vmem:[#allocation16] ss:$8 sps:$4 sm:$0xff]  }
 0x193   :  { %1158 = vmatpush2.bf16.msra.mxu1 %v2082_v43  ;;  %v2159_v43 = vld [vmem:[#allocation16 + $0xf4] ss:$8 sps:$4 sm:$0xff]  }
 0x216   :  { %v663_v30 = vpop.f32.mrf.mxu1 }
 0x217   :  { %v664_v31 = vadd.f32 %v663_v30, %v462_v28  ;;  %v2135_v28 = vld [vmem:[#allocation16 + $0x74] ss:$8 sps:$4 sm:$0xff]   ;;  %v2136_v30 = vld [vmem:[#allocation16 + $0x60] ss:$8 sps:$4 sm:$0xff]  }
 0x218   :  { %v665_v32 = vpop.f32.mrf.mxu1  ;;  %1625 = vmatprep.subr.bf16.mxu1 %v2135_v28 }
 0x219   :  { %v666_v33 = vadd.f32 %v665_v32, %v466_v29  ;;  %v670_v34 = vmax.f32 %v664_v31, 0.0  ;;  %v2138_v29 = vld [vmem:[#allocation16 + $0x64] ss:$8 sps:$4 sm:$0xff]   ;;  %v2141_v31 = vld [vmem:[#allocation16 + $0x54] ss:$8 sps:$4 sm:$0xff]  }
 0x21a   :  { %v667_v35 = vpop.f32.mrf.mxu1  ;;  %v2139_v32 = vld [vmem:[#allocation16 + $0x50] ss:$8 sps:$4 sm:$0xff]  }
 0x21b   :  { %v671_v36 = vmax.f32 %v666_v33, 0.0  ;;  %v672_v39 = vpack.c.bf16 %v670_v34, %v670_v34  ;;  %v2144_v33 = vld [vmem:[#allocation16 + $0x44] ss:$8 sps:$4 sm:$0xff]   ;;  %v2142_v34 = vld [vmem:[#allocation16 + $0x40] ss:$8 sps:$4 sm:$0xff]  }
 0x21c   :  { %v668_v37 = vpop.f32.mrf.mxu1  ;;  %v2147_v35 = vld [vmem:[#allocation16 + $0x34] ss:$8 sps:$4 sm:$0xff]  }
 0x21d   :  { %v673_v38 = vpack.c.bf16 %v671_v36, %v671_v36  ;;  %v2145_v36 = vld [vmem:[#allocation16 + $0x30] ss:$8 sps:$4 sm:$0xff]   ;;  %v2150_v37 = vld [vmem:[#allocation16 + $0x24] ss:$8 sps:$4 sm:$0xff]  }
 0x21f   :  { %910 = vmatprep.mubr.bf16.mxu0 %v673_v38  ;;  %v2148_v38 = vld [vmem:[#allocation16 + $0x20] ss:$8 sps:$4 sm:$0xff]  }
 0x220   :  { %911 = vmatmul.mubr.bf16.vlgmr.msra.gmra.mxu0 %v672_v39  ;;  %v2153_v39 = vld [vmem:[#allocation16 + $0x14] ss:$8 sps:$4 sm:$0xff]  }
 0x221   :  { %1377 = vmatpush1.bf16.msra.mxu0 %v2085_v45  ;;  %v2157_v45 = vld [vmem:[#allocation16 + $0xf0] ss:$8 sps:$4 sm:$0xff]  }
 0x222   :  { %1378 = vmatprep.subr.bf16.mxu0 %v2090_v48  ;;  %v2160_v48 = vld [vmem:[#allocation16 + $0xe0] ss:$8 sps:$4 sm:$0xff]  }
 0x225   :  { %1379 = vmatpush1.bf16.msra.mxu0 %v2088_v49  ;;  %v2165_v49 = vld [vmem:[#allocation16 + $0xd4] ss:$8 sps:$4 sm:$0xff]  }
 0x226   :  { %1380 = vmatprep.subr.bf16.mxu0 %v2093_v50  ;;  %v2163_v50 = vld [vmem:[#allocation16 + $0xd0] ss:$8 sps:$4 sm:$0xff]  }
 0x229   :  { %1381 = vmatpush1.bf16.msra.mxu0 %v2091_v51  ;;  %v2168_v51 = vld [vmem:[#allocation16 + $0xc4] ss:$8 sps:$4 sm:$0xff]  }
 0x22a   :  { %1382 = vmatprep.subr.bf16.mxu0 %v2096_v52  ;;  %v2166_v52 = vld [vmem:[#allocation16 + $0xc0] ss:$8 sps:$4 sm:$0xff]  }
 0x22d   :  { %1383 = vmatpush1.bf16.msra.mxu0 %v2094_v53  ;;  %v2171_v53 = vld [vmem:[#allocation16 + $0xb4] ss:$8 sps:$4 sm:$0xff]  }
 0x22e   :  { %1384 = vmatprep.subr.bf16.mxu0 %v2099_v54  ;;  %v2169_v54 = vld [vmem:[#allocation16 + $0xb0] ss:$8 sps:$4 sm:$0xff]  }
 0x231   :  { %1385 = vmatpush1.bf16.msra.mxu0 %v2097_v55  ;;  %v2174_v55 = vld [vmem:[#allocation16 + $0xa4] ss:$8 sps:$4 sm:$0xff]  }
 0x232   :  { %1386 = vmatprep.subr.bf16.mxu0 %v2102_v9  ;;  %v2172_v9 = vld [vmem:[#allocation16 + $0xa0] ss:$8 sps:$4 sm:$0xff]  }
 0x235   :  { %1387 = vmatpush1.bf16.msra.mxu0 %v2100_v56  ;;  %v955_v56 = vld [vmem:[%s2516_s7] sm:$0x3] }
 0x236   :  { %1388 = vmatprep.subr.bf16.mxu0 %v2105_v57  ;;  %v960_v57 = vrot.slane %v955_v56, %v2472_v44 }
 0x239   :  { %1389 = vmatpush1.bf16.msra.mxu0 %v2103_v58  ;;  %v964_v58 = vrot.slane %v955_v56, %v2477_v46 }
 0x23a   :  { %1390 = vmatprep.subr.bf16.mxu0 %v2108_v59 }
 0x23d   :  { %1391 = vmatpush1.bf16.msra.mxu0 %v2106_v60 }
 0x23e   :  { %1392 = vmatprep.subr.bf16.mxu0 %v2111_v61 }
 0x241   :  { %1393 = vmatpush2.bf16.msra.mxu0 %v2109_v62 }
 0x242   :  { %1394 = vmatprep.subr.bf16.mxu0 %v2114_v63 }
 0x245   :  { %1395 = vmatpush2.bf16.msra.mxu0 %v2112_v0 }
 0x246   :  { %1396 = vmatprep.subr.bf16.mxu0 %v2117_v1 }
 0x249   :  { %1397 = vmatpush2.bf16.msra.mxu0 %v2115_v2 }
 0x24a   :  { %1398 = vmatprep.subr.bf16.mxu0 %v2120_v3 }
 0x24d   :  { %1399 = vmatpush2.bf16.msra.mxu0 %v2118_v4 }
 0x24e   :  { %1400 = vmatprep.subr.bf16.mxu0 %v2123_v5  ;;  %v2177_v5 = vld [vmem:[#allocation16 + $0x94] ss:$8 sps:$4 sm:$0xff]  }
 0x251   :  { %1401 = vmatpush2.bf16.msra.mxu0 %v2121_v6  ;;  %v2175_v6 = vld [vmem:[#allocation16 + $0x90] ss:$8 sps:$4 sm:$0xff]  }
 0x252   :  { %1402 = vmatprep.subr.bf16.mxu0 %v2126_v7  ;;  %v2180_v7 = vld [vmem:[#allocation16 + $0x84] ss:$8 sps:$4 sm:$0xff]  }
 0x255   :  { %1403 = vmatpush2.bf16.msra.mxu0 %v2124_v8  ;;  %v2178_v8 = vld [vmem:[#allocation16 + $0x80] ss:$8 sps:$4 sm:$0xff]  }
 0x256   :  { %1404 = vmatprep.subr.bf16.mxu0 %v2129_v23  ;;  %v1453_v23 = vld [vmem:[%s2520_s11] sm:$0x3] }
 0x259   :  { %1405 = vmatpush2.bf16.msra.mxu0 %v2127_v24  ;;  %v1458_v24 = vrot.slane %v1453_v23, %v2472_v44 }
 0x25a   :  { %1406 = vmatprep.subr.bf16.mxu0 %v2132_v25  ;;  %v1462_v25 = vrot.slane %v1453_v23, %v2477_v46 }
 0x25d   :  { %1407 = vmatpush2.bf16.msra.mxu0 %v2130_v26 }
 0x2e0   :  { %v912_v13 = vpop.f32.mrf.mxu0 }
 0x2e1   :  { %v913_v14 = vadd.f32 %v912_v13, %v711_v11  ;;  %v1209_v11 = vrot.slane %v1204_v10, %v2472_v44 }
 0x2e2   :  { %v914_v15 = vpop.f32.mrf.mxu0 }
 0x2e3   :  { %v915_v16 = vadd.f32 %v914_v15, %v715_v12  ;;  %v919_v17 = vmax.f32 %v913_v14, 0.0  ;;  %v1213_v12 = vrot.slane %v1204_v10, %v2477_v46 }
 0x2e4   :  { %v916_v18 = vpop.f32.mrf.mxu0 }
 0x2e5   :  { %v920_v19 = vmax.f32 %v915_v16, 0.0  ;;  %v921_v22 = vpack.c.bf16 %v919_v17, %v919_v17 }
 0x2e6   :  { %v917_v20 = vpop.f32.mrf.mxu0 }
 0x2e7   :  { %v922_v21 = vpack.c.bf16 %v920_v19, %v920_v19 }
 0x2e9   :  { %1159 = vmatprep.mubr.bf16.mxu1 %v922_v21 }
 0x2ea   :  { %1160 = vmatmul.mubr.bf16.vlgmr.msra.gmra.mxu1 %v921_v22 }
 0x2eb   :  { %1626 = vmatpush1.bf16.msra.mxu1 %v2133_v27 }
 0x2ec   :  { %1627 = vmatprep.subr.bf16.mxu1 %v2138_v29 }
 0x2ef   :  { %1628 = vmatpush1.bf16.msra.mxu1 %v2136_v30 }
 0x2f0   :  { %1629 = vmatprep.subr.bf16.mxu1 %v2141_v31 }
 0x2f3   :  { %1630 = vmatpush1.bf16.msra.mxu1 %v2139_v32 }
 0x2f4   :  { %1631 = vmatprep.subr.bf16.mxu1 %v2144_v33 }
 0x2f7   :  { %1632 = vmatpush1.bf16.msra.mxu1 %v2142_v34 }
 0x2f8   :  { %1633 = vmatprep.subr.bf16.mxu1 %v2147_v35 }
 0x2fb   :  { %1634 = vmatpush1.bf16.msra.mxu1 %v2145_v36 }
 0x2fc   :  { %1635 = vmatprep.subr.bf16.mxu1 %v2150_v37 }
 0x2ff   :  { %1636 = vmatpush1.bf16.msra.mxu1 %v2148_v38 }
 0x300   :  { %1637 = vmatprep.subr.bf16.mxu1 %v2153_v39 }
 0x303   :  { %1638 = vmatpush1.bf16.msra.mxu1 %v2151_v40 }
 0x304   :  { %1639 = vmatprep.subr.bf16.mxu1 %v2156_v41 }
 0x307   :  { %1640 = vmatpush1.bf16.msra.mxu1 %v2154_v42 }
 0x308   :  { %1641 = vmatprep.subr.bf16.mxu1 %v2159_v43 }
 0x30b   :  { %1642 = vmatpush2.bf16.msra.mxu1 %v2157_v45 }
 0x30c   :  { %1643 = vmatprep.subr.bf16.mxu1 %v2162_v47 }
 0x30f   :  { %1644 = vmatpush2.bf16.msra.mxu1 %v2160_v48 }
 0x310   :  { %1645 = vmatprep.subr.bf16.mxu1 %v2165_v49 }
 0x313   :  { %1646 = vmatpush2.bf16.msra.mxu1 %v2163_v50 }
 0x314   :  { %1647 = vmatprep.subr.bf16.mxu1 %v2168_v51 }
 0x317   :  { %1648 = vmatpush2.bf16.msra.mxu1 %v2166_v52 }
 0x318   :  { %1649 = vmatprep.subr.bf16.mxu1 %v2171_v53 }
 0x31b   :  { %1650 = vmatpush2.bf16.msra.mxu1 %v2169_v54 }
 0x31c   :  { %1651 = vmatprep.subr.bf16.mxu1 %v2174_v55 }
 0x31f   :  { %1652 = vmatpush2.bf16.msra.mxu1 %v2172_v9 }
 0x320   :  { %1653 = vmatprep.subr.bf16.mxu1 %v2177_v5 }
 0x323   :  { %1654 = vmatpush2.bf16.msra.mxu1 %v2175_v6 }
 0x324   :  { %1655 = vmatprep.subr.bf16.mxu1 %v2180_v7 }
 0x327   :  { %1656 = vmatpush2.bf16.msra.mxu1 %v2178_v8 }
 0x3aa   :  { %v1161_v59 = vpop.f32.mrf.mxu1 }
 0x3ab   :  { %v1162_v60 = vadd.f32 %v1161_v59, %v960_v57 }
 0x3ac   :  { %v1163_v61 = vpop.f32.mrf.mxu1 }
 0x3ad   :  { %v1164_v62 = vadd.f32 %v1163_v61, %v964_v58  ;;  %v1168_v63 = vmax.f32 %v1162_v60, 0.0 }
 0x3ae   :  { %v1165_v0 = vpop.f32.mrf.mxu1 }
 0x3af   :  { %v1169_v1 = vmax.f32 %v1164_v62, 0.0  ;;  %v1170_v4 = vpack.c.bf16 %v1168_v63, %v1168_v63 }
 0x3b0   :  { %v1166_v2 = vpop.f32.mrf.mxu1 }
 0x3b1   :  { %v1171_v3 = vpack.c.bf16 %v1169_v1, %v1169_v1 }
 0x3b3   :  { %1408 = vmatprep.mubr.bf16.mxu0 %v1171_v3 }
 0x3b4   :  { %1409 = vmatmul.mubr.bf16.vlgmr.msra.gmra.mxu0 %v1170_v4 }
 0x474   :  { %v1410_v13 = vpop.f32.mrf.mxu0 }
 0x475   :  { %v1411_v14 = vadd.f32 %v1410_v13, %v1209_v11 }
 0x476   :  { %v1412_v15 = vpop.f32.mrf.mxu0 }
 0x477   :  { %v1413_v16 = vadd.f32 %v1412_v15, %v1213_v12  ;;  %v1417_v17 = vmax.f32 %v1411_v14, 0.0 }
 0x478   :  { %v1414_v18 = vpop.f32.mrf.mxu0 }
 0x479   :  { %v1418_v19 = vmax.f32 %v1413_v16, 0.0  ;;  %v1419_v22 = vpack.c.bf16 %v1417_v17, %v1417_v17 }
 0x47a   :  { %v1415_v20 = vpop.f32.mrf.mxu0 }
 0x47b   :  { %v1420_v21 = vpack.c.bf16 %v1418_v19, %v1418_v19 }
 0x47d   :  { %1657 = vmatprep.mubr.bf16.mxu1 %v1420_v21 }
 0x47e   :  { %1658 = vmatmul.mubr.bf16.vlgmr.msra.gmra.mxu1 %v1419_v22 }
 0x53e   :  { %v1659_v26 = vpop.f32.mrf.mxu1 }
 0x53f   :  { %v1660_v27 = vadd.f32 %v1659_v26, %v1458_v24 }
 0x540   :  { %v1661_v28 = vpop.f32.mrf.mxu1 }
 0x541   :  { %1666 = vst [vmem:[#allocation18] sm:$0xff] %v1660_v27  ;;  %v1662_v29 = vadd.f32 %v1661_v28, %v1462_v25 }
 0x542   :  { %v1663_v30 = vpop.f32.mrf.mxu1 }
 0x543   :  { %1667 = vst [vmem:[#allocation18 + $0x8] sm:$0xff] %v1662_v29 }
 0x544   :  { %v1664_v31 = vpop.f32.mrf.mxu1 }
 0x545   :  { %2312 = shalt.err (!%p2309_p6)
}
 0x546   :  { %1677 = dma.vmem_to_hbm [thread:$0]  %s1675_s16, 256, %s2523_s14, [#allocation9]  }
 0x547   :  { %2329 = dma.done.wait [#allocation9], 256  }
 0x548   :  { %2330 = vsyncadd [#allocation9], 4294967040 }
 0x549   :  { %1681 = vsyncpa [#allocation8], 1 }
 0x54a   :  { %1682 = vsyncpa [#allocation11], 1 }
 0x54b   :  { %1683 = vsyncpa [#allocation14], 1 }
 0x54c   :  { %1684 = vsyncpa [#allocation17], 1 }
 0x54d   :  { %1685 = vsyncpa [#allocation9], 1 }

</bundles_post_ra>
